<compile_context>
chip_gen: v6e
topology: v6e:2x2x1
jax: 0.10.0
libtpu: 0.0.40
codegen_flags: <defaults>
</compile_context>

<pallas_src>
import math
import functools

import jax
import jax.numpy as jnp
from jax.experimental import pallas as pl
from jax.experimental.pallas import tpu as pltpu


def _round_up(x, m):
    return (x + m - 1) // m * m


def _vmem_sizes():
    """(physical_vmem_bytes, usable_budget_bytes) for the current TPU gen."""
    phys = 64 << 20                       # conservative default (v7x per-TC VMEM)
    try:
        info = pltpu.get_tpu_info()
        phys = int(getattr(info, "vmem_capacity_bytes", phys))
    except Exception:
        pass
    budget = max(phys - (16 << 20), 32 << 20)   # leave headroom for the compiler
    return phys, budget


# ---------------------------------------------------------------------------
# Path 1: small vocab -- one-hot x VMEM-resident table on the MXU.
# ---------------------------------------------------------------------------
def embedding_onehot_kernel(ids_ref, lut_ref, out_ref, *, scale):
    """ids_ref: (tb, 1) i32 VMEM; lut_ref: (vocab, dm) VMEM; out_ref: (tb, dm)."""
    vocab = lut_ref.shape[0]
    tb = ids_ref.shape[0]

    ids = jnp.clip(ids_ref[...], 0, vocab - 1)                     # (tb, 1)
    col = jax.lax.broadcasted_iota(jnp.int32, (tb, vocab), 1)      # (tb, vocab)
    # Exact 0/1 one-hot in the table dtype (no scale folded in -> no bf16
    # rounding of sqrt(d_model), and one fewer full (tb, vocab) VPU pass).
    one_hot = (col == ids).astype(lut_ref.dtype)

    acc = jnp.dot(one_hot, lut_ref[...], preferred_element_type=jnp.float32)
    # Scale applied to the tiny (tb, dm) f32 accumulator, then single cast+store.
    out_ref[...] = (acc * scale).astype(out_ref.dtype)


# ---------------------------------------------------------------------------
# Path 2: large vocab -- HBM row-gather with pipelined per-row DMAs.
# ---------------------------------------------------------------------------
def embedding_gather_kernel(ids_ref, lut_hbm, out_ref, sem, *, scale, depth):
    """ids_ref: (n_pad,) i32 SMEM (scalar prefetch); lut_hbm: (vocab, dm) HBM;
    out_ref: (tb, dm) VMEM output tile; sem: DMA semaphores, shape (depth,)."""
    tb = out_ref.shape[0]
    vocab = lut_hbm.shape[0]
    base = pl.program_id(0) * tb

    def fetch(r, slot):
        tok = jnp.clip(ids_ref[base + r], 0, vocab - 1)
        pltpu.make_async_copy(
            lut_hbm.at[pl.ds(tok, 1)],        # (1, dm) row in HBM
            out_ref.at[pl.ds(r, 1)],          # (1, dm) row of the output tile
            sem.at[slot],
        ).start()

    # Prime `depth` outstanding row DMAs.
    for r in range(depth):
        fetch(r, r)

    def body(r, carry):
        slot = r % depth
        # Wait for the row DMA previously issued on this slot.
        pltpu.make_async_copy(
            lut_hbm.at[pl.ds(0, 1)], out_ref.at[pl.ds(r, 1)], sem.at[slot]
        ).wait()
        if depth < tb:
            @pl.when(r + depth < tb)
            def _():
                fetch(r + depth, slot)
        return carry

    jax.lax.fori_loop(0, tb, body, 0)

    # All rows landed; apply sqrt(d_model) in f32 and store the full tile.
    out_ref[...] = (out_ref[...].astype(jnp.float32) * scale).astype(out_ref.dtype)


# ---------------------------------------------------------------------------
# Wrapper
# ---------------------------------------------------------------------------
def embeddings_forward(ids, lut, d_model=None, tb=512, force_path=None):
    """ids: (B, S) int token ids, lut: (vocab, d_model) -> (B, S, d_model)."""
    B, S = ids.shape
    vocab, dm = lut.shape
    if d_model is None:
        d_model = dm
    scale = math.sqrt(float(d_model))
    itemsize = jnp.dtype(lut.dtype).itemsize

    n = B * S
    sub = 16 if itemsize == 2 else 8            # bf16 packs rows in sublane pairs
    tb_eff = min(_round_up(tb, sub), _round_up(n, sub))
    # Prefer >= 2 token tiles so the "parallel" axis can feed both v7x TCs.
    if n > sub and _round_up(n, tb_eff) // tb_eff < 2:
        tb_eff = max(sub, _round_up((n + 1) // 2, sub))
    n_pad = _round_up(n, tb_eff)
    num_tiles = n_pad // tb_eff

    flat_ids = ids.reshape(n).astype(jnp.int32)
    if n_pad != n:
        flat_ids = jnp.pad(flat_ids, (0, n_pad - n))

    phys_vmem, vmem_budget = _vmem_sizes()

    # VMEM budget for the one-hot (VMEM-resident table) fast path.
    table_bytes = vocab * dm * itemsize
    onehot_step_bytes = (
        2 * tb_eff * 1 * 4                    # ids tiles (double buffered)
        + 2 * tb_eff * dm * itemsize          # out tiles (double buffered)
        + tb_eff * vocab * (itemsize + 4)     # one-hot + compare temps
        + tb_eff * dm * 4                     # f32 MXU accumulator
    )
    onehot_needed = 2 * table_bytes + onehot_step_bytes + (2 << 20)

    # One-hot path does vocab x more MACs than the gather needs -> only use it
    # for small vocabularies that also fit comfortably in VMEM.
    use_onehot = (vocab <= 4096) and (onehot_needed <= vmem_budget)
    if force_path == "onehot":
        use_onehot = True
    elif force_path == "gather":
        use_onehot = False

    if use_onehot:
        ids2d = flat_ids.reshape(n_pad, 1)
        vmem_limit = int(min(max(onehot_needed, 16 << 20), phys_vmem))
        out_flat = pl.pallas_call(
            functools.partial(embedding_onehot_kernel, scale=scale),
            out_shape=jax.ShapeDtypeStruct((n_pad, dm), lut.dtype),
            grid_spec=pltpu.PrefetchScalarGridSpec(
                num_scalar_prefetch=0,
                grid=(num_tiles,),
                in_specs=[
                    # Token-id tile for this grid step.
                    pl.BlockSpec((tb_eff, 1), lambda i: (i, 0)),
                    # Full embedding table, resident in VMEM across all steps.
                    pl.BlockSpec((vocab, dm), lambda i: (0, 0)),
                ],
                out_specs=pl.BlockSpec((tb_eff, dm), lambda i: (i, 0)),
            ),
            compiler_params=pltpu.CompilerParams(
                dimension_semantics=("parallel",),   # disjoint tiles -> megacore OK
                vmem_limit_bytes=vmem_limit,
            ),
        )(ids2d, lut)
    else:
        depth = min(8, tb_eff)                 # outstanding row DMAs per tile
        gather_needed = 2 * tb_eff * dm * itemsize + tb_eff * dm * 4 + (4 << 20)
        vmem_limit = int(min(max(gather_needed, 16 << 20), phys_vmem))
        out_flat = pl.pallas_call(
            functools.partial(embedding_gather_kernel, scale=scale, depth=depth),
            out_shape=jax.ShapeDtypeStruct((n_pad, dm), lut.dtype),
            grid_spec=pltpu.PrefetchScalarGridSpec(
                num_scalar_prefetch=1,                       # flat ids -> SMEM
                grid=(num_tiles,),
                in_specs=[pl.BlockSpec(memory_space=pl.ANY)],  # table stays in HBM
                out_specs=pl.BlockSpec((tb_eff, dm), lambda i, ids: (i, 0)),
                scratch_shapes=[pltpu.SemaphoreType.DMA((depth,))],
            ),
            compiler_params=pltpu.CompilerParams(
                dimension_semantics=("parallel",),
                vmem_limit_bytes=vmem_limit,
            ),
        )(flat_ids, lut)

    return out_flat[:n].reshape(B, S, dm)


if __name__ == "__main__":
    # Small deterministic problem consistent with the module's forward:
    #   vocab=40, d_model=32, batch=2, seq=8.
    vocab = 40
    d_model = 32
    B, S = 2, 8

    key = jax.random.PRNGKey(0)
    k_lut, k_ids = jax.random.split(key)

    # nn.Embedding default init ~ N(0, 1).
    lut = jax.random.normal(k_lut, (vocab, d_model), dtype=jnp.float32)
    ids = jax.random.randint(k_ids, (B, S), 0, vocab, dtype=jnp.int32)

    # Pure-JAX reference (same semantics as the PyTorch module).
    ref = jnp.take(lut, ids.reshape(-1), axis=0).reshape(B, S, d_model) * math.sqrt(d_model)

    # Auto-selected path (small vocab -> one-hot MXU path).
    out = jax.block_until_ready(embeddings_forward(ids, lut, d_model))
    assert out.shape == (B, S, d_model)
    assert jnp.allclose(out, ref, atol=1e-5, rtol=1e-5), "one-hot path mismatch"

    # Force the HBM DMA-gather path (used for production vocab sizes).
    out_g = jax.block_until_ready(embeddings_forward(ids, lut, d_model, force_path="gather"))
    assert jnp.allclose(out_g, ref, atol=1e-5, rtol=1e-5), "gather path mismatch"

    print("KERNEL_OK")
</pallas_src>

<mosaic_0001>
module attributes {stable_mosaic.version = 11 : i64} {
  func.func @embedding_onehot_kernel(%arg0: i32, %arg1: memref<8x1xi32, #tpu.memory_space<vmem>>, %arg2: memref<40x32xf32, #tpu.memory_space<vmem>>, %arg3: memref<8x32xf32, #tpu.memory_space<vmem>>) attributes {dimension_semantics = [#tpu.dimension_semantics<parallel>], iteration_bounds = array<i64: 2>, scalar_prefetch = 0 : i64, scratch_operands = 0 : i64, tpu.core_type = #tpu.core_type<tc>, window_params = [{transform_indices = @transform_0, window_bounds = array<i64: 8, 1>}, {pipeline_mode = #tpu.pipeline_mode<synchronous>, transform_indices = @transform_1, window_bounds = array<i64: 40, 32>}, {transform_indices = @transform_2, window_bounds = array<i64: 8, 32>}]} {
    %c0 = arith.constant 0 : index
    %c0_0 = arith.constant 0 : index
    %0 = vector.load %arg1[%c0, %c0_0] : memref<8x1xi32, #tpu.memory_space<vmem>>, vector<8x1xi32>
    %c0_i32 = arith.constant 0 : i32
    %c39_i32 = arith.constant 39 : i32
    %1 = vector.broadcast %c0_i32 : i32 to vector<8x1xi32>
    %2 = arith.maxsi %1, %0 : vector<8x1xi32>
    %3 = vector.broadcast %c39_i32 : i32 to vector<8x1xi32>
    %4 = arith.minsi %3, %2 : vector<8x1xi32>
    %5 = tpu.iota {dimensions = array<i32: 1>} : vector<8x40xi32>
    %6 = vector.broadcast %4 : vector<8x1xi32> to vector<8x40xi32>
    %7 = arith.cmpi eq, %5, %6 : vector<8x40xi32>
    %8 = arith.extui %7 : vector<8x40xi1> to vector<8x40xi32>
    %9 = arith.sitofp %8 : vector<8x40xi32> to vector<8x40xf32>
    %c0_1 = arith.constant 0 : index
    %c0_2 = arith.constant 0 : index
    %10 = vector.load %arg2[%c0_1, %c0_2] : memref<40x32xf32, #tpu.memory_space<vmem>>, vector<40x32xf32>
    %cst = arith.constant dense<0.000000e+00> : vector<8x32xf32>
    %11 = tpu.matmul %9, %10, %cst {dimension_numbers = #tpu.dot_dimension_numbers<[1], [0], [0], [1], [0, 0, 1, 1], [], []>} : vector<8x40xf32>, vector<40x32xf32>, vector<8x32xf32> -> vector<8x32xf32>
    %cst_3 = arith.constant 5.65685415 : f32
    %12 = vector.broadcast %cst_3 : f32 to vector<8x32xf32>
    %13 = arith.mulf %11, %12 : vector<8x32xf32>
    %c0_4 = arith.constant 0 : index
    %c0_5 = arith.constant 0 : index
    %14 = vector.load %arg3[%c0_4, %c0_5] : memref<8x32xf32, #tpu.memory_space<vmem>>, vector<8x32xf32>
    tpu.vector_store %arg3[%c0_4, %c0_5], %13 {strides = array<i32>} : memref<8x32xf32, #tpu.memory_space<vmem>>, vector<8x32xf32>,
    return
  }
  func.func @transform_0(%arg0: i32) -> (i32, i32) {
    %c0_i32 = arith.constant 0 : i32
    %c0_i32_0 = arith.constant 0 : i32
    return %arg0, %c0_i32 : i32, i32
  }
  func.func @transform_1(%arg0: i32) -> (i32, i32) {
    %c0_i32 = arith.constant 0 : i32
    %c0_i32_0 = arith.constant 0 : i32
    %c0_i32_1 = arith.constant 0 : i32
    return %c0_i32, %c0_i32_0 : i32, i32
  }
  func.func @transform_2(%arg0: i32) -> (i32, i32) {
    %c0_i32 = arith.constant 0 : i32
    %c0_i32_0 = arith.constant 0 : i32
    return %arg0, %c0_i32 : i32, i32
  }
}

</mosaic_0001>

<bundles_post_ra>
// kernel: tpu_custom_call.1
= control target key start
LH: loop header
LB: loop body
LE: loop exit
PB: predicated region body
PF: predicated region fallthrough
CT: control target
= control target key end

     0   :  { %7 = vsyncpa [#allocation3], 0  ;;  %s570_s0 = inlined_call_operand.vmem [shape: s32[16,1], index: 0, kind: input, shape index: {}]   ;;  %s571_s1 = inlined_call_operand.vmem [shape: f32[40,32], index: 1, kind: input, shape index: {}]   ;;  %s572_s2 = inlined_call_operand.hbm [shape: f32[16,32], index: 2, kind: output, shape index: {}]  }
   0x1   :  { %9 = vsyncpa [#allocation3 + $0x1], 0  ;;  %s462_s9 = smov 0   ;;  %s464_s10 = smov 0  }
   0x2   :  { %s466_s11 = smov 0   ;;  %s468_s12 = smov 0  }
   0x3 LB: > { %s483_s13 = sadd.s32 4294967295, %s441_s12   ;;  %s307_s14 = sadd.s32 4294967294, %s441_s12   ;;  %s441_s12 = sphi %s468_s12, %s578_s12   ;;  %s437_s11 = sphi %s466_s11, %s577_s11   ;;  %s433_s10 = sphi %s464_s10, %s576_s10   ;;  %s429_s9 = sphi %s462_s9, %s575_s9  }
   0x4   : > { %s487_s15 = sadd.s32 1, %s441_s12   ;;  %s69_s16 = sadd.s32 1, %s437_s11 }
   0x5   : > { %s66_s17 = ssub.s32 %s441_s12, %s487_s15  ;;  %p79_p0 = scmp.ne.s32.totalorder %s437_s11, %s433_s10 }
   0x6   : > { %p67_p1 = scmp.eq.s32.totalorder %s66_s17, 0  ;;  %p80_p2 = scmp.eq.s32.totalorder %s483_s13, 1 }
   0x7   : > { %p85_p3 = scmp.ne.s32.totalorder %s433_s10, %s429_s9  ;;  %p86_p4 = scmp.eq.s32.totalorder %s307_s14, 1 }
   0x8   : > { %s498_s18 = scalar_select %p67_p1, %s437_s11, %s69_s16  }
   0x9   : > { %p500_p5 = por %p80_p2, %p79_p0  ;;  %p504_p6 = por %p86_p4, %p85_p3 }
   0xa   : > { %p310_p7 = scmp.ge.s32.totalorder %s441_s12, 1  ;;  %p114_p8 = scmp.lt.s32.totalorder %s441_s12, 3 }
   0xc   : > { %p115_p9 = pnand %p310_p7, %p114_p8 }
   0xd   : > { %p135_p10 = scmp.lt.s32.totalorder (!%p115_p9), %s483_s13, 1  ;;  %s132_s8 = sand.u32 (!%p115_p9), 1, %s433_s10  }
   0xe   : > { %118 = sbr.rel (%p115_p9) target bundleno = 362 (0x16a), region = 28  ;;  %s311_s14 = sshll.u32 (!%p115_p9), %s132_s8, 3 }
   0xf   : > { %s316_s16 = sshll.u32 (!%p115_p9), %s483_s13, 7  ;;  %s134_s17 = scalar_lea.vmem (!%p115_p9), [#allocation2], %s311_s14 }
  0x10   : > { %s248_s21 = sshll.u32 (!%p115_p9), %s134_s17, 4  ;;  %s535_s24 = scalar_lea.hbm (!%p115_p9), %s572_s2, %s316_s16  ;;  %s249_s21 = int_to_ptr.vmem [resolvable:$true] %s248_s21 }
  0x11   : > { %s381_s26 = scalar_lea.vmem (!%p115_p9), %s249_s21, 128 }
  0x12   : > { %p382_p11 = scmp.ne.s32.totalorder (!%p115_p9), %s249_s21, %s381_s26 }
  0x13   : > { %v156_v0 = vld [vmem:[%s571_s1 + $0x20] sm:$0xff]  ;;  %v443_v1 = vmov 0   ;;  %v444_v2 = vmov 0.0   ;;  %v155_v3 = vld [vmem:[%s571_s1 + $0x18] sm:$0xff]  ;;  %s136_s25 = scalar_select %p135_p10, %s483_s13, 1  ;;  %v154_v4 = vld [vmem:[%s571_s1 + $0x10] sm:$0xff]  ;;  %v144_v10 = vlaneseq }
  0x14   : > { %380 = vset.pattern.permute.xlu0 %v443_v1  ;;  %325 = vmatprep.subr.mxu0 %v444_v2  ;;  %v153_v5 = vld [vmem:[%s571_s1 + $0x8] sm:$0xff]  ;;  %v152_v7 = vld [vmem:[%s571_s1] sm:$0xff]  ;;  %vm445_vm1 = vmmov 0   ;;  %vm157_vm3 = vcmask 326656   ;;  %vm232_vm5 = vcmask 261120   ;;  %p383_p12 = pnand %p382_p11, %p500_p5  ;;  %s446_s13 = smov [#allocation2]  }
  0x15   : > { %326 = vmatpush3.msra.mxu0 %v156_v0  ;;  %s312_s28 = sshll.u32 %s136_s25, 3  ;;  %335 = vmatprep.mubr.msk.f32.mxu0 %vm445_vm1, %v444_v2  ;;  %v145_v11 = vand.u32 127, %v144_v10  ;;  %s235_s25 = scalar_lea.sflag [#allocation3], %s132_s8 }
  0x16   : > { %327 = vmatprep.subr.mxu0 %v444_v2  ;;  %s138_s3 = scalar_lea.vmem %s570_s0, %s312_s28  ;;  %p384_p13 = pneg %p383_p12 }
  0x17   : > { %328 = vmatpush3.msra.mxu0 %v155_v3  ;;  %v139_v6 = vld [vmem:[%s138_s3] sm:$0xff]  ;;  %s385_s27 = sshll.u32 %s446_s13, 4  ;;  %s386_s27 = int_to_ptr.vmem [resolvable:$false] %s385_s27 }
  0x18   : > { %329 = vmatprep.subr.mxu0 %v444_v2  ;;  %vm140_vm0 = vcmp.gt.s32.totalorder %v139_v6, 0  ;;  %s387_s28 = scalar_lea.vmem %s386_s27, 256  ;;  %p388_p0 = scmp.lt.s32.totalorder %s249_s21, %s386_s27 }
  0x19   : > { %330 = vmatpush3.msra.mxu0 %v154_v4  ;;  %v141_v8 = vsel %vm140_vm0, %v139_v6, 0  ;;  %p389_p1 = scmp.lt.s32.totalorder %s387_s28, %s381_s26 }
  0x1a   : > { %331 = vmatprep.subr.mxu0 %v444_v2  ;;  %vm142_vm2 = vcmp.lt.s32.totalorder %v141_v8, 39 }
  0x1b   : > { %332 = vmatpush3.msra.mxu0 %v153_v5  ;;  %v143_v9 = vsel %vm142_vm2, %v141_v8, 39  ;;  %p390_p2 = por %p389_p1, %p388_p0 }
  0x1c   : > { %333 = vmatprep.subr.mxu0 %v444_v2  ;;  %147 = vperm.xlu0 %380, %v143_v9  }
  0x1d   : > { %334 = vmatpush3.msra.mxu0 %v152_v7  ;;  %p391_p3 = pnand %p390_p2, %p384_p13 }
  0x97   : > { %v148_v12 = vpop.permute.xlu0 %147 }
  0x98   : > { %vm149_vm4 = vcmp.eq.s32.totalorder %v145_v11, %v148_v12 }
  0x99   : > { %v313_v13 = vsel %vm149_vm4, 1.0, %v444_v2 }
  0x9a   : > { %336 = vmatmul.mubr.msk.f32.vlgmr.msra.gmra.mxu0 %vm157_vm3, %v313_v13 }
 0x15a   : > { %v227_v14 = vpop.f32.mrf.mxu0 }
 0x15b   : > { %v231_v15 = vmul.f32 5.656854, %v227_v14 }
 0x15c   : > { %v337_v16 = vpop.f32.mrf.mxu0 }
 0x15d   : > { %233 = vst.msk [vmem:[%s134_s17] sm:$0xff] %vm232_vm5, %v231_v15 }
 0x15e   : > { %394 = shalt.err (!%p391_p3)
}
 0x15f   : > { %s395_s29 = scalar_lea.hbm %s535_s24, 128  ;;  %s399_s4 = scalar_lea.hbm %s572_s2, 256 }
 0x160   : > { %p396_p4 = scmp.ne.s32.totalorder %s535_s24, %s395_s29  ;;  %p400_p9 = scmp.lt.s32.totalorder %s535_s24, %s572_s2 }
 0x161   : > { %p401_p10 = scmp.lt.s32.totalorder %s399_s4, %s395_s29 }
 0x162   : > { %p397_p7 = pnand %p396_p4, %p500_p5 }
 0x163   : > { %p402_p11 = por %p401_p10, %p400_p9 }
 0x164   : > { %p398_p8 = pneg %p397_p7 }
 0x166   : > { %p403_p12 = pnand %p402_p11, %p398_p8 }
 0x168   : > { %406 = shalt.err (!%p403_p12)
}
 0x169   : > { %338 = dma.vmem_to_hbm [thread:$0]  (%p500_p5), %s249_s21, 128, %s535_s24, %s235_s25  }
 0x16a PF: > { %p344_p13 = scmp.ge.s32.totalorder %s441_s12, 2  ;;  %s260_s7 = sand.u32 1, %s429_s9  }
 0x16b   : > { %s261_s8 = scalar_lea.sflag [#allocation3], %s260_s7 }
 0x16c   : > { %p341_p0 = pnand %p344_p13, %p504_p6 }
 0x16e   : > { %p342_p1 = pneg %p341_p0 }
 0x170   : > { %424 = dma.done.wait (%p342_p1), %s261_s8, 128  }
 0x171   : > { %426 = vsyncadd (%p342_p1), %s261_s8, 4294967168  ;;  %p12_p2 = scmp.ge.s32.totalorder %s487_s15, 4   ;;  %s575_s9 = smov %s433_s10 }
 0x172   : > { %s576_s10 = smov %s437_s11  ;;  %s577_s11 = smov %s498_s18 }
 0x173   : > { %s578_s12 = smov %s487_s15  ;;  %14 = sbr.rel (!%p12_p2) target bundleno = 3 (0x3), region = 63 }
 0x178   :  { %266 = vsyncpa [#allocation3], 1 }
 0x179   :  { %268 = vsyncpa [#allocation3 + $0x1], 1 }

</bundles_post_ra>
